<compile_context>
chip_gen: v7x
topology: tpu7x:2x2x1
jax: 0.10.0
libtpu: 0.0.40
codegen_flags: <defaults>
</compile_context>

<pallas_src>
import jax
import jax.numpy as jnp
from jax import lax
from jax.experimental import pallas as pl
from jax.experimental.pallas import tpu as pltpu


def _smooth_l1(d):
    # F.smooth_l1_loss with default beta=1.0, reduction='none'
    ad = jnp.abs(d)
    return jnp.where(ad < 1.0, 0.5 * d * d, ad - 0.5)


def trajectory_loss_kernel(pred_ref, aux_ref, out_ref):
    pred = pred_ref[...]                         # (K, M, T*2) f32, lane-dense
    aux = aux_ref[...]                           # (M, 2*T*2 + K) f32

    K, M, T2 = pred.shape

    label = aux[:, :T2]                          # (M, T*2)
    valid = aux[:, T2:2 * T2]                    # (M, T*2)  xy-expanded mask
    logp = aux[:, 2 * T2:2 * T2 + K]             # (M, K)

    # compile-time endpoint mask over the folded (T*2) lane axis
    lane = lax.broadcasted_iota(jnp.int32, (1, 1, T2), 2)
    end_mask = (lane >= T2 - 2).astype(jnp.float32)          # (1, 1, T*2)

    # shared residual tensor, reused for argmin and regression
    d = pred - label[None, :, :]                              # (K, M, T*2)

    # --- endpoint squared distances (argmin invariant under sqrt) -> (K, M, 1)
    norms_sq = jnp.sum(d * d * end_mask, axis=-1, keepdims=True)

    # --- argmin over modes (leading axis) with first-index tie-break
    min_n = jnp.min(norms_sq, axis=0, keepdims=True)          # (1, M, 1)
    k_iota = lax.broadcasted_iota(jnp.int32, (K, M, 1), 0)
    idx_cand = jnp.where(norms_sq == min_n, k_iota, jnp.int32(K))
    best = jnp.min(idx_cand, axis=0, keepdims=True)           # (1, M, 1)
    onehot = (k_iota == best).astype(jnp.float32)             # (K, M, 1)

    # --- best-mode residual: VPU weighted sum over the leading K axis
    best_d = jnp.sum(d * onehot, axis=0)                      # (M, T*2)
    sl = _smooth_l1(best_d)                                   # (M, T*2)

    # --- combined regression + endpoint loss: one full-width lane reduction
    # sum(valid) here == 2 * sum(valid_original)  (xy-expanded in wrapper)
    inv_sum_valid = 1.0 / jnp.sum(valid)
    w = valid * inv_sum_valid + end_mask[0] * jnp.float32(1.0 / (2.0 * M))
    l_regend = jnp.sum(sl * w)

    # --- NLL over mode log-probabilities (reduction='mean'): constant 1/M
    best_m1 = best[0]                                         # (M, 1), same layout
    k_iota_mk = lax.broadcasted_iota(jnp.int32, (M, K), 1)
    onehot_mk = (k_iota_mk == best_m1).astype(jnp.float32)    # (M, K)
    nll = -jnp.sum(logp * onehot_mk) * jnp.float32(1.0 / M)

    out_ref[0] = (l_regend + nll).astype(out_ref.dtype)


def trajectory_loss(prediction, log_prob, valid, label):
    M, K, T, C = prediction.shape
    T2 = T * C

    # prediction laid out (K, M, T*C): mode-reduce becomes leading-axis VPU
    # adds; minor dims (M, T*C) give full 8-sublane occupancy at M=8.
    pred_f = jnp.transpose(
        prediction.reshape(M, K, T2), (1, 0, 2)).astype(jnp.float32)

    # fold + concatenate the three small aux inputs into one lane-dense array
    # (cuts input DMA count from 4 to 2; fixed per-DMA latency dominates here).
    label_f = label.reshape(M, T2).astype(jnp.float32)
    valid_f = jnp.broadcast_to(valid, (M, T, C)).reshape(M, T2).astype(jnp.float32)
    aux = jnp.concatenate(
        [label_f, valid_f, log_prob.astype(jnp.float32)], axis=1)  # (M, 2*T2+K)

    out = pl.pallas_call(
        trajectory_loss_kernel,
        out_shape=jax.ShapeDtypeStruct((1,), jnp.float32),
        in_specs=[pl.BlockSpec(memory_space=pltpu.MemorySpace.VMEM)] * 2,
        out_specs=pl.BlockSpec(memory_space=pltpu.MemorySpace.SMEM),
    )(pred_f, aux)
    return out[0]


def trajectory_loss_ref(prediction, log_prob, valid, label):
    # pure-JAX reference mirroring the PyTorch forward exactly
    M = prediction.shape[0]
    norms = jnp.linalg.norm(prediction[:, :, -1] - label[:, -1][:, None], axis=-1)
    best = jnp.argmin(norms, axis=-1)
    sel = prediction[jnp.arange(M), best]                            # (M, T, 2)
    l_reg = jnp.sum(_smooth_l1(sel - label) * valid) / (jnp.sum(valid) * 2.0)
    nll = -jnp.mean(log_prob[jnp.arange(M), best])
    l_end = jnp.mean(_smooth_l1(sel[:, -1] - label[:, -1]))
    return l_reg + nll + l_end


if __name__ == "__main__":
    M, K, T, C = 8, 6, 12, 2
    key = jax.random.PRNGKey(0)
    k1, k2, k3, k4 = jax.random.split(key, 4)

    prediction = jax.random.normal(k1, (M, K, T, C), dtype=jnp.float32) * 2.0
    label = jax.random.normal(k2, (M, T, C), dtype=jnp.float32) * 2.0
    logits = jax.random.normal(k3, (M, K), dtype=jnp.float32)
    log_prob = jax.nn.log_softmax(logits, axis=-1)
    valid = (jax.random.uniform(k4, (M, T, 1)) > 0.3).astype(jnp.float32)
    # make sure the mask is not all-zero (original module assumes this too)
    valid = valid.at[:, 0, 0].set(1.0)

    loss = trajectory_loss(prediction, log_prob, valid, label)
    loss = jax.block_until_ready(loss)

    ref = trajectory_loss_ref(prediction, log_prob, valid, label)
    assert jnp.allclose(loss, ref, rtol=1e-5, atol=1e-5), (loss, ref)

    print("KERNEL_OK")
</pallas_src>

<mosaic_0001>
module attributes {stable_mosaic.version = 11 : i64} {
  func.func @trajectory_loss_kernel(%arg0: memref<6x8x24xf32, #tpu.memory_space<vmem>>, %arg1: memref<8x54xf32, #tpu.memory_space<vmem>>, %arg2: memref<1xf32, #tpu.memory_space<smem>>) attributes {dimension_semantics = [], scalar_prefetch = 0 : i64, scratch_operands = 0 : i64, tpu.core_type = #tpu.core_type<tc>} {
    %c0 = arith.constant 0 : index
    %c0_0 = arith.constant 0 : index
    %c0_1 = arith.constant 0 : index
    %0 = vector.load %arg0[%c0, %c0_0, %c0_1] : memref<6x8x24xf32, #tpu.memory_space<vmem>>, vector<6x8x24xf32>
    %c0_2 = arith.constant 0 : index
    %c0_3 = arith.constant 0 : index
    %1 = vector.load %arg1[%c0_2, %c0_3] : memref<8x54xf32, #tpu.memory_space<vmem>>, vector<8x54xf32>
    %2 = vector.extract_strided_slice %1 {offsets = [0, 0], sizes = [8, 24], strides = [1, 1]} : vector<8x54xf32> to vector<8x24xf32>
    %3 = vector.extract_strided_slice %1 {offsets = [0, 24], sizes = [8, 24], strides = [1, 1]} : vector<8x54xf32> to vector<8x24xf32>
    %4 = vector.extract_strided_slice %1 {offsets = [0, 48], sizes = [8, 6], strides = [1, 1]} : vector<8x54xf32> to vector<8x6xf32>
    %5 = tpu.iota {dimensions = array<i32: 2>} : vector<1x1x24xi32>
    %c22_i32 = arith.constant 22 : i32
    %6 = vector.broadcast %c22_i32 : i32 to vector<1x1x24xi32>
    %7 = arith.cmpi sge, %5, %6 : vector<1x1x24xi32>
    %8 = arith.extui %7 : vector<1x1x24xi1> to vector<1x1x24xi32>
    %9 = arith.sitofp %8 : vector<1x1x24xi32> to vector<1x1x24xf32>
    %10 = vector.shape_cast %2 : vector<8x24xf32> to vector<1x8x24xf32>
    %11 = vector.broadcast %10 : vector<1x8x24xf32> to vector<6x8x24xf32>
    %12 = arith.subf %0, %11 : vector<6x8x24xf32>
    %13 = arith.mulf %12, %12 : vector<6x8x24xf32>
    %14 = vector.broadcast %9 : vector<1x1x24xf32> to vector<6x8x24xf32>
    %15 = arith.mulf %13, %14 : vector<6x8x24xf32>
    %cst = arith.constant dense<0.000000e+00> : vector<6x8xf32>
    %16 = vector.multi_reduction <add>, %15, %cst [2] : vector<6x8x24xf32> to vector<6x8xf32>
    %17 = vector.shape_cast %16 : vector<6x8xf32> to vector<6x8x1xf32>
    %cst_4 = arith.constant dense<0x7F800000> : vector<8x1xf32>
    %18 = vector.multi_reduction <minimumf>, %17, %cst_4 [0] : vector<6x8x1xf32> to vector<8x1xf32>
    %19 = vector.shape_cast %18 : vector<8x1xf32> to vector<1x8x1xf32>
    %20 = tpu.iota {dimensions = array<i32: 0>} : vector<6x8x1xi32>
    %21 = vector.broadcast %19 : vector<1x8x1xf32> to vector<6x8x1xf32>
    %22 = arith.cmpf oeq, %17, %21 : vector<6x8x1xf32>
    %c6_i32 = arith.constant 6 : i32
    %23 = vector.broadcast %c6_i32 : i32 to vector<6x8x1xi32>
    %24 = arith.select %22, %20, %23 : vector<6x8x1xi1>, vector<6x8x1xi32>
    %cst_5 = arith.constant dense<2147483647> : vector<8x1xi32>
    %25 = vector.multi_reduction <minsi>, %24, %cst_5 [0] : vector<6x8x1xi32> to vector<8x1xi32>
    %26 = vector.shape_cast %25 : vector<8x1xi32> to vector<1x8x1xi32>
    %27 = vector.broadcast %26 : vector<1x8x1xi32> to vector<6x8x1xi32>
    %28 = arith.cmpi eq, %20, %27 : vector<6x8x1xi32>
    %29 = arith.extui %28 : vector<6x8x1xi1> to vector<6x8x1xi32>
    %30 = arith.sitofp %29 : vector<6x8x1xi32> to vector<6x8x1xf32>
    %31 = vector.broadcast %30 : vector<6x8x1xf32> to vector<6x8x24xf32>
    %32 = arith.mulf %12, %31 : vector<6x8x24xf32>
    %cst_6 = arith.constant dense<0.000000e+00> : vector<8x24xf32>
    %33 = vector.multi_reduction <add>, %32, %cst_6 [0] : vector<6x8x24xf32> to vector<8x24xf32>
    %34 = math.absf %33 : vector<8x24xf32>
    %cst_7 = arith.constant 1.000000e+00 : f32
    %35 = vector.broadcast %cst_7 : f32 to vector<8x24xf32>
    %36 = arith.cmpf olt, %34, %35 : vector<8x24xf32>
    %cst_8 = arith.constant 5.000000e-01 : f32
    %37 = vector.broadcast %cst_8 : f32 to vector<8x24xf32>
    %38 = arith.mulf %37, %33 : vector<8x24xf32>
    %39 = arith.mulf %38, %33 : vector<8x24xf32>
    %cst_9 = arith.constant 5.000000e-01 : f32
    %40 = vector.broadcast %cst_9 : f32 to vector<8x24xf32>
    %41 = arith.subf %34, %40 : vector<8x24xf32>
    %42 = arith.select %36, %39, %41 : vector<8x24xi1>, vector<8x24xf32>
    %43 = vector.shape_cast %3 : vector<8x24xf32> to vector<1x8x24xf32>
    %cst_10 = arith.constant dense<0.000000e+00> : vector<1xf32>
    %44 = vector.multi_reduction <add>, %43, %cst_10 [1, 2] : vector<1x8x24xf32> to vector<1xf32>
    %45 = vector.shape_cast %44 : vector<1xf32> to vector<1x1x1xf32>
    %46 = vector.extract %45[0, 0, 0] : f32 from vector<1x1x1xf32>
    %cst_11 = arith.constant 1.000000e+00 : f32
    %47 = arith.divf %cst_11, %46 : f32
    %48 = vector.broadcast %47 : f32 to vector<8x24xf32>
    %49 = arith.mulf %3, %48 : vector<8x24xf32>
    %50 = vector.shape_cast %9 : vector<1x1x24xf32> to vector<1x24xf32>
    %cst_12 = arith.constant 6.250000e-02 : f32
    %51 = vector.broadcast %cst_12 : f32 to vector<1x24xf32>
    %52 = arith.mulf %50, %51 : vector<1x24xf32>
    %53 = vector.broadcast %52 : vector<1x24xf32> to vector<8x24xf32>
    %54 = arith.addf %49, %53 : vector<8x24xf32>
    %55 = arith.mulf %42, %54 : vector<8x24xf32>
    %56 = vector.shape_cast %55 : vector<8x24xf32> to vector<1x8x24xf32>
    %cst_13 = arith.constant dense<0.000000e+00> : vector<1xf32>
    %57 = vector.multi_reduction <add>, %56, %cst_13 [1, 2] : vector<1x8x24xf32> to vector<1xf32>
    %58 = vector.shape_cast %57 : vector<1xf32> to vector<1x1x1xf32>
    %59 = vector.extract %58[0, 0, 0] : f32 from vector<1x1x1xf32>
    %60 = vector.shape_cast %26 : vector<1x8x1xi32> to vector<8x1xi32>
    %61 = tpu.iota {dimensions = array<i32: 1>} : vector<8x6xi32>
    %62 = vector.broadcast %60 : vector<8x1xi32> to vector<8x6xi32>
    %63 = arith.cmpi eq, %61, %62 : vector<8x6xi32>
    %64 = arith.extui %63 : vector<8x6xi1> to vector<8x6xi32>
    %65 = arith.sitofp %64 : vector<8x6xi32> to vector<8x6xf32>
    %66 = arith.mulf %4, %65 : vector<8x6xf32>
    %67 = vector.shape_cast %66 : vector<8x6xf32> to vector<1x8x6xf32>
    %cst_14 = arith.constant dense<0.000000e+00> : vector<1xf32>
    %68 = vector.multi_reduction <add>, %67, %cst_14 [1, 2] : vector<1x8x6xf32> to vector<1xf32>
    %69 = vector.shape_cast %68 : vector<1xf32> to vector<1x1x1xf32>
    %70 = vector.extract %69[0, 0, 0] : f32 from vector<1x1x1xf32>
    %cst_15 = arith.constant 0.000000e+00 : f32
    %71 = arith.subf %cst_15, %70 : f32
    %cst_16 = arith.constant 1.250000e-01 : f32
    %72 = arith.mulf %71, %cst_16 : f32
    %73 = arith.addf %59, %72 : f32
    %c0_17 = arith.constant 0 : index
    %74 = memref.load %arg2[%c0_17] : memref<1xf32, #tpu.memory_space<smem>>
    memref.store %73, %arg2[%c0_17] : memref<1xf32, #tpu.memory_space<smem>>
    return
  }
}

</mosaic_0001>

<bundles_post_ra>
// kernel: tpu_custom_call.1
= control target key start
LH: loop header
LB: loop body
LE: loop exit
PB: predicated region body
PF: predicated region fallthrough
CT: control target
= control target key end

     0   :  { %7 = vsyncpa [#allocation3], 0  ;;  %s459_s0 = inlined_call_operand.hbm [shape: f32[6,8,24], index: 0, kind: input, shape index: {}]   ;;  %s460_s1 = inlined_call_operand.hbm [shape: f32[8,54], index: 1, kind: input, shape index: {}]   ;;  %s461_s2 = inlined_call_operand.hbm [shape: f32[1], index: 2, kind: output, shape index: {}]  }
   0x1   :  { %8 = vsyncpa [#allocation6], 0 }
   0x2   :  { %9 = vsyncpa [#allocation4], 0  ;;  %s328_s9 = smov [#allocation2]   ;;  %s268_s13 = scalar_lea.hbm %s459_s0, 768 }
   0x3   :  { %s15_s10 = sshll.u32 %s328_s9, 4  ;;  %p269_p0 = scmp.ne.s32.totalorder %s459_s0, %s268_s13  ;;  %s16_s10 = int_to_ptr.vmem [resolvable:$true] %s15_s10 }
   0x4   :  { %p272_p1 = scmp.lt.u32.totalorder %s268_s13, %s459_s0 }
   0x6   :  { %p274_p2 = pnand %p272_p1, %p269_p0 }
   0x8   :  { %277 = shalt.err (!%p274_p2)
}
   0x9   :  { %s278_s18 = scalar_lea.vmem %s16_s10, 768  ;;  %p283_p4 = scmp.lt.s32.totalorder %s16_s10, %s16_s10 }
   0xa   :  { %p279_p3 = scmp.ne.s32.totalorder %s16_s10, %s278_s18  ;;  %p284_p5 = scmp.lt.s32.totalorder %s278_s18, %s278_s18 }
   0xc   :  { %p285_p6 = por %p284_p5, %p283_p4 }
   0xe   :  { %p286_p7 = pnand %p285_p6, %p279_p3 }
  0x10   :  { %289 = shalt.err (!%p286_p7)
}
  0x11   :  { %s329_s19 = smov 128   ;;  %s330_s20 = smov 8  }
  0x12   :  { %21 = dma.hbm_to_vmem [thread:$0]  %s459_s0, 768, %s16_s10, [#allocation3], %s329_s19, %s329_s19, %s330_s20  }
  0x13   :  { %s331_s23 = smov [#allocation5]   ;;  %s290_s27 = scalar_lea.hbm %s460_s1, 128 }
  0x14   :  { %s28_s24 = sshll.u32 %s331_s23, 4  ;;  %p291_p8 = scmp.ne.s32.totalorder %s460_s1, %s290_s27  ;;  %s29_s24 = int_to_ptr.vmem [resolvable:$true] %s28_s24 }
  0x15   :  { %p294_p9 = scmp.lt.u32.totalorder %s290_s27, %s460_s1 }
  0x17   :  { %p296_p10 = pnand %p294_p9, %p291_p8 }
  0x19   :  { %299 = shalt.err (!%p296_p10)
}
  0x1a   :  { %s300_s4 = scalar_lea.vmem %s29_s24, 128  ;;  %p305_p12 = scmp.lt.s32.totalorder %s29_s24, %s29_s24 }
  0x1b   :  { %p301_p11 = scmp.ne.s32.totalorder %s29_s24, %s300_s4  ;;  %p306_p13 = scmp.lt.s32.totalorder %s300_s4, %s300_s4 }
  0x1d   :  { %p307_p0 = por %p306_p13, %p305_p12 }
  0x1f   :  { %p308_p1 = pnand %p307_p0, %p301_p11 }
  0x21   :  { %311 = shalt.err (!%p308_p1)
}
  0x22   :  { %31 = dma.hbm_to_vmem [thread:$0]  %s460_s1, 128, %s29_s24, [#allocation6]  }
  0x23   :  { %322 = dma.done.wait [#allocation3], 768  }
  0x24   :  { %323 = vsyncadd [#allocation3], 4294966528 }
  0x25   :  { %324 = dma.done.wait [#allocation6], 128  }
  0x26   :  { %325 = vsyncadd [#allocation6], 4294967168  ;;  %v45_v0 = vlaneseq  ;;  %v381_v2 = vld [vmem:[#allocation5] sm:$0xff]  ;;  %v38_v3 = vld [vmem:[#allocation2] sm:$0xff]  ;;  %s332_s6 = smov 104   ;;  %v333_v8 = vmov 0.0  }
  0x27   :  { %v39_v4 = vld [vmem:[#allocation2 + $0x8] sm:$0xff]  ;;  %156 = vrot.lane.b32.xlu0 %v381_v2, %s332_s6  ;;  %v386_v5 = vsub.f32 %v38_v3, %v381_v2  ;;  %v42_v7 = vld [vmem:[#allocation2 + $0x20] sm:$0xff]  ;;  %vm68_vm1 = vcmask 195584   ;;  %v40_v18 = vld [vmem:[#allocation2 + $0x10] sm:$0xff]  ;;  %s334_s1 = smov 24   ;;  %v335_v49 = vmov 6  }
  0x28   :  { %v378_v1 = vand.u32 127, %v45_v0  ;;  %v389_v6 = vsub.f32 %v39_v4, %v381_v2  ;;  %v393_v10 = vsub.f32 %v42_v7, %v381_v2  ;;  %v43_v11 = vld [vmem:[#allocation2 + $0x28] sm:$0xff]  ;;  %v409_v23 = vsub.f32 %v40_v18, %v381_v2  ;;  %v41_v24 = vld [vmem:[#allocation2 + $0x18] sm:$0xff]  ;;  %s336_s7 = smov 48   ;;  %s337_s10 = smov 80  }
  0x29   :  { %v56_v12 = vmul.f32 %v386_v5, %v386_v5  ;;  %v402_v17 = vsub.f32 %v43_v11, %v381_v2  ;;  %v415_v28 = vsub.f32 %v41_v24, %v381_v2  ;;  %s312_s18 = scalar_lea.hbm %s461_s2, 16 }
  0x2a   :  { %vm47_vm0 = vcmp.ge.s32.totalorder %v378_v1, 22  ;;  %v57_v13 = vmul.f32 %v389_v6, %v389_v6  ;;  %v60_v16 = vmul.f32 %v393_v10, %v393_v10  ;;  %v58_v27 = vmul.f32 %v409_v23, %v409_v23  ;;  %p313_p2 = scmp.ne.s32.totalorder %s461_s2, %s312_s18  ;;  %p316_p3 = scmp.lt.u32.totalorder %s312_s18, %s461_s2 }
  0x2b   :  { %v238_v9 = vsel %vm47_vm0, 1.0, %v333_v8  ;;  %v61_v22 = vmul.f32 %v402_v17, %v402_v17  ;;  %v59_v31 = vmul.f32 %v415_v28, %v415_v28 }
  0x2c   :  { %v62_v14 = vmul.f32 %v238_v9, %v56_v12  ;;  %v63_v15 = vmul.f32 %v238_v9, %v57_v13  ;;  %v66_v21 = vmul.f32 %v238_v9, %v60_v16  ;;  %v64_v30 = vmul.f32 %v238_v9, %v58_v27  ;;  %p318_p4 = pnand %p316_p3, %p313_p2 }
  0x2d   :  { %v67_v26 = vmul.f32 %v238_v9, %v61_v22  ;;  %v65_v33 = vmul.f32 %v238_v9, %v59_v31  ;;  %v174_v37 = vmul.f32 0.0625, %v238_v9 }
  0x2e   :  { %v69_v19 = vsel %vm68_vm1, %v62_v14, 0.0  ;;  %v72_v20 = vsel %vm68_vm1, %v63_v15, 0.0  ;;  %v81_v25 = vsel %vm68_vm1, %v66_v21, 0.0  ;;  %v75_v32 = vsel %vm68_vm1, %v64_v30, 0.0 }
  0x2f   :  { %70 = vadd.xlane.f32.xlu1 %v69_v19  ;;  %v84_v29 = vsel %vm68_vm1, %v67_v26, 0.0  ;;  %v78_v34 = vsel %vm68_vm1, %v65_v33, 0.0 }
  0x33   :  { %73 = vadd.xlane.f32.xlu1 %v72_v20 }
  0x37   :  { %82 = vadd.xlane.f32.xlu1 %v81_v25 }
  0x3b   :  { %85 = vadd.xlane.f32.xlu1 %v84_v29 }
  0x3f   :  { %76 = vadd.xlane.f32.xlu1 %v75_v32 }
  0x43   :  { %79 = vadd.xlane.f32.xlu1 %v78_v34 }
  0x54   :  { %176 = vrot.lane.b32.xlu1 %v174_v37, %s334_s1 }
  0x99   :  { %v157_v35 = vpop.permute.xlu0 %156 }
  0x9a   :  { %v159_v36 = vsel %vm68_vm1, %v157_v35, 0.0 }
  0x9b   :  { %160 = vadd.xlane.f32.xlu0 %v159_v36 }
  0xbc   :  { %v71_v38 = vpop.xlane.xlu1 %70 }
  0xc0   :  { %v74_v39 = vpop.xlane.xlu1 %73 }
  0xc4   :  { %v83_v40 = vpop.xlane.xlu1 %82 }
  0xc5   :  { %v87_v42 = vmin.f32 %v71_v38, %v83_v40 }
  0xc8   :  { %v86_v41 = vpop.xlane.xlu1 %85 }
  0xc9   :  { %v88_v43 = vmin.f32 %v74_v39, %v86_v41 }
  0xcb   :  { %v89_v45 = vmin.f32 %v87_v42, %v88_v43 }
  0xcc   :  { %v77_v44 = vpop.xlane.xlu1 %76 }
  0xd0   :  { %v80_v46 = vpop.xlane.xlu1 %79 }
  0xd1   :  { %v90_v47 = vmin.f32 %v77_v44, %v80_v46 }
  0xd3   :  { %v91_v48 = vmin.f32 %v89_v45, %v90_v47 }
  0xd5   :  { %vm92_vm2 = vcmp.eq.f32.partialorder %v71_v38, %v91_v48  ;;  %vm93_vm3 = vcmp.eq.f32.partialorder %v74_v39, %v91_v48  ;;  %vm94_vm4 = vcmp.eq.f32.partialorder %v77_v44, %v91_v48  ;;  %vm95_vm5 = vcmp.eq.f32.partialorder %v80_v46, %v91_v48 }
  0xd6   :  { %vm96_vm6 = vcmp.eq.f32.partialorder %v83_v40, %v91_v48  ;;  %vm97_vm7 = vcmp.eq.f32.partialorder %v86_v41, %v91_v48  ;;  %v98_v50 = vsel %vm92_vm2, 0, %v335_v49  ;;  %v99_v51 = vsel %vm93_vm3, 1, %v335_v49 }
  0xd7   :  { %v100_v52 = vsel %vm94_vm4, 2, %v335_v49  ;;  %v101_v53 = vsel %vm95_vm5, 3, %v335_v49  ;;  %v102_v54 = vsel %vm96_vm6, 4, %v335_v49  ;;  %v103_v55 = vsel %vm97_vm7, 5, %v335_v49 }
  0xd8   :  { %vm104_vm8 = vcmp.lt.s32.totalorder %v98_v50, %v102_v54  ;;  %vm106_vm9 = vcmp.lt.s32.totalorder %v99_v51, %v103_v55  ;;  %vm110_vm10 = vcmp.lt.s32.totalorder %v100_v52, %v101_v53  ;;  %vm207_vm6 = vcmask 48128  }
  0xd9   :  { %v105_v56 = vsel %vm104_vm8, %v98_v50, %v102_v54  ;;  %v107_v57 = vsel %vm106_vm9, %v99_v51, %v103_v55  ;;  %v111_v58 = vsel %vm110_vm10, %v100_v52, %v101_v53 }
  0xda   :  { %vm108_vm11 = vcmp.lt.s32.totalorder %v105_v56, %v107_v57 }
  0xdb   :  { %v109_v59 = vsel %vm108_vm11, %v105_v56, %v107_v57 }
  0xdc   :  { %vm112_vm12 = vcmp.lt.s32.totalorder %v109_v59, %v111_v58 }
  0xdd   :  { %v113_v60 = vsel %vm112_vm12, %v109_v59, %v111_v58 }
  0xde   :  { %vm195_vm13 = vcmp.eq.s32.totalorder %v378_v1, %v113_v60  ;;  %v177_v1 = vpop.permute.xlu1 %176  ;;  %vm114_vm14 = vcmp.eq.s32.totalorder %v113_v60, 0  ;;  %vm115_vm15 = vcmp.eq.s32.totalorder %v113_v60, 1  ;;  %vm116_vm0 = vcmp.eq.s32.totalorder %v113_v60, 2 }
  0xdf   :  { %v246_v61 = vsel %vm195_vm13, 1.0, %v333_v8  ;;  %v239_v19 = vsel %vm114_vm14, 1.0, %v333_v8  ;;  %v240_v20 = vsel %vm115_vm15, 1.0, %v333_v8  ;;  %v241_v24 = vsel %vm116_vm0, 1.0, %v333_v8 }
  0xe0   :  { %199 = vrot.lane.b32.xlu0 %v246_v61, %s336_s7  ;;  %v132_v21 = vmul.f32 %v239_v19, %v386_v5  ;;  %v133_v22 = vmul.f32 %v240_v20, %v389_v6  ;;  %vm117_vm2 = vcmp.eq.s32.totalorder %v113_v60, 3  ;;  %v134_v25 = vmul.f32 %v241_v24, %v409_v23 }
  0xe1   :  { %v242_v27 = vsel %vm117_vm2, 1.0, %v333_v8  ;;  %vm118_vm3 = vcmp.eq.s32.totalorder %v113_v60, 4  ;;  %vm119_vm4 = vcmp.eq.s32.totalorder %v113_v60, 5 }
  0xe2   :  { %v139_v26 = vsel %vm68_vm1, %v133_v22, 0.0  ;;  %v135_v30 = vmul.f32 %v242_v27, %v415_v28  ;;  %v141_v31 = vsel %vm68_vm1, %v134_v25, 0.0  ;;  %v243_v5 = vsel %vm118_vm3, 1.0, %v333_v8 }
  0xe3   :  { %v136_v32 = vmul.f32 %v243_v5, %v393_v10  ;;  %v244_v33 = vsel %vm119_vm4, 1.0, %v333_v8 }
  0xe4   :  { %v143_v23 = vsel %vm68_vm1, %v135_v30, 0.0  ;;  %v137_v35 = vmul.f32 %v244_v33, %v402_v17 }
  0xe5   :  { %v145_v36 = vsel %vm68_vm1, %v136_v32, 0.0 }
  0xe6   :  { %v147_v28 = vsel %vm68_vm1, %v137_v35, 0.0 }
 0x128   :  { %v161_v62 = vpop.xlane.xlu0 %160 }
 0x129   :  { %v162_v63 = vrot.slane %v161_v62, 4 }
 0x12b   :  { %v163_v0 = vadd.f32 %v162_v63, %v161_v62 }
 0x12d   :  { %v164_v3 = vrot.slane %v163_v0, 2 }
 0x12f   :  { %v165_v4 = vadd.f32 %v164_v3, %v163_v0 }
 0x131   :  { %v166_v7 = vrot.slane %v165_v4, 1 }
 0x133   :  { %v167_v9 = vadd.f32 %v166_v7, %v165_v4 }
 0x135   :  { %247 = vpush %v167_v9 }
 0x152   :  { %v200_v16 = vpop.permute.xlu0 %199 }
 0x153   :  { %v202_v18 = vmul.f32 %v200_v16, %v381_v2 }
 0x166   :  { %s248_s8 = spop %247 }
 0x167   :  { %v169_v11 = vstv %s248_s8 }
 0x168   :  { %266 = vrcp.f32 %v169_v11 }
 0x172   :  { %v267_v12 = vpop.eup %266 }
 0x173   :  { %249 = vpush %v267_v12 }
 0x1a4   :  { %s250_s9 = spop %249 }
 0x1a5   :  { %v172_v13 = vstv %s250_s9 }
 0x1a6   :  { %v173_v14 = vmul.f32 %v172_v13, %v381_v2  ;;  %v138_v2 = vsel %vm68_vm1, %v132_v21, 0.0 }
 0x1a7   :  { %v140_v29 = vadd.f32 %v139_v26, %v138_v2 }
 0x1a8   :  { %v179_v15 = vadd.f32 %v177_v1, %v173_v14 }
 0x1a9   :  { %v142_v6 = vadd.f32 %v141_v31, %v140_v29 }
 0x1aa   :  { %181 = vrot.lane.b32.xlu1 %v179_v15, %s332_s6 }
 0x1ab   :  { %v144_v34 = vadd.f32 %v143_v23, %v142_v6 }
 0x1ad   :  { %v146_v37 = vadd.f32 %v145_v36, %v144_v34 }
 0x1ae   :  { %204 = vrot.lane.b32.xlu1 %v202_v18, %s337_s10 }
 0x1af   :  { %v148_v38 = vadd.f32 %v147_v28, %v146_v37 }
 0x1b1   :  { %v149_v39 = vand.u32 2147483647, %v148_v38  ;;  %v151_v40 = vmul.f32 0.5, %v148_v38 }
 0x1b3   :  { %v152_v41 = vmul.f32 %v151_v40, %v148_v38  ;;  %v245_v42 = vadd.f32 -0.5, %v149_v39  ;;  %vm150_vm5 = vcmp.lt.f32.partialorder %v149_v39, 1.0 }
 0x1b5   :  { %v154_v43 = vsel %vm150_vm5, %v152_v41, %v245_v42 }
 0x21c   :  { %v182_v10 = vpop.permute.xlu1 %181 }
 0x21d   :  { %v184_v44 = vmul.f32 %v182_v10, %v154_v43 }
 0x21f   :  { %v185_v8 = vsel %vm68_vm1, %v184_v44, 0.0 }
 0x220   :  { %186 = vadd.xlane.f32.xlu1 %v185_v8  ;;  %v205_v45 = vpop.permute.xlu1 %204 }
 0x221   :  { %v208_v17 = vsel %vm207_vm6, %v205_v45, 0.0 }
 0x222   :  { %209 = vadd.xlane.f32.xlu0 %v208_v17 }
 0x2ad   :  { %v187_v46 = vpop.xlane.xlu1 %186 }
 0x2ae   :  { %v188_v47 = vrot.slane %v187_v46, 4 }
 0x2af   :  { %v210_v48 = vpop.xlane.xlu0 %209 }
 0x2b0   :  { %v189_v49 = vadd.f32 %v188_v47, %v187_v46  ;;  %v211_v50 = vrot.slane %v210_v48, 4 }
 0x2b2   :  { %v190_v51 = vrot.slane %v189_v49, 2  ;;  %v212_v52 = vadd.f32 %v211_v50, %v210_v48 }
 0x2b4   :  { %v191_v53 = vadd.f32 %v190_v51, %v189_v49  ;;  %v213_v54 = vrot.slane %v212_v52, 2 }
 0x2b6   :  { %v214_v55 = vadd.f32 %v213_v54, %v212_v52  ;;  %v192_v56 = vrot.slane %v191_v53, 1 }
 0x2b8   :  { %v193_v57 = vadd.f32 %v192_v56, %v191_v53  ;;  %v215_v58 = vrot.slane %v214_v55, 1 }
 0x2ba   :  { %251 = vpush %v193_v57  ;;  %v216_v59 = vadd.f32 %v215_v58, %v214_v55 }
 0x2bc   :  { %253 = vpush %v216_v59 }
 0x2eb   :  { %s252_s11 = spop %251 }
 0x2ed   :  { %s254_s12 = spop %253 }
 0x2ee   :  { %s218_s13 = ssub.f32 0.0, %s254_s12 }
 0x2f0   :  { %s219_s14 = smul.f32 0.125, %s218_s13 }
 0x2f2   :  { %s220_s15 = sadd.f32 %s252_s11, %s219_s14 }
 0x2f4   :  { %222 = sst [smem:[#allocation7]] %s220_s15 }
 0x2f5   :  { %321 = shalt.err (!%p318_p4)
}
 0x2f6   :  { %s338_s23 = smov [#allocation7]  }
 0x2f7   :  { %230 = dma.smem_to_hbm %s338_s23, 16, %s461_s2, [#allocation4]  }
 0x2f8   :  { %326 = dma.done.wait [#allocation4], 16  }
 0x2f9   :  { %327 = vsyncadd [#allocation4], 4294967280 }
 0x2fa   :  { %234 = sfence }
 0x2fb   :  { %235 = vsyncpa [#allocation3], 1 }
 0x2fc   :  { %236 = vsyncpa [#allocation6], 1 }
 0x2fd   :  { %237 = vsyncpa [#allocation4], 1 }

</bundles_post_ra>
